<compile_context>
chip_gen: v7x
topology: tpu7x:2x2x1
jax: 0.10.0
libtpu: 0.0.40
codegen_flags: <defaults>
</compile_context>

<pallas_src>
import jax
import jax.numpy as jnp
from jax.experimental import pallas as pl
from jax.experimental.pallas import tpu as pltpu


NEG_SLOPE = 0.01  # torch.nn.functional.leaky_relu default


def _make_mlp_kernel(n_hidden_layers, n_in, n_hidden):
    """Fused MLP forward, batch-on-lanes layout, packed parameter slabs."""
    L = n_hidden_layers

    def kernel(x_ref, w_ref, b_ref, y_ref):
        # x_ref: (TB, n_in)      batch-major tile streamed straight from HBM
        # w_ref: (L+1, H, K_max) weight slab: layer l in [l, :, :in_l]; wo column in [L, :, 0:1]
        # b_ref: (L+1, H, 1)     bias slab:   layer l in [l];           bo scalar in [L, 0, 0]
        # y_ref: (1, TB)         lane-dense output tile

        # First hidden layer: (H, n_in) @ (n_in, TB) -> (H, TB).
        # The x tile transpose is a tiny in-kernel XLU op (separate VLIW slot).
        h = jnp.dot(w_ref[0, :, :n_in], x_ref[...].T,
                    preferred_element_type=jnp.float32)
        h = h + b_ref[0]                       # (H, 1) broadcast over lanes
        h = jnp.maximum(h, NEG_SLOPE * h)      # leaky_relu: mul + max on the VPU

        # Remaining hidden layers: h = leaky_relu(W @ h + b)
        for l in range(1, L):
            h = jnp.dot(w_ref[l, :, :n_hidden], h,
                        preferred_element_type=jnp.float32)
            h = h + b_ref[l]
            h = jnp.maximum(h, NEG_SLOPE * h)

        # Output layer (H -> 1): VPU multiply + sublane reduce instead of an N=1 MXU push.
        wo = w_ref[L, :, 0:1]                  # (H, 1)
        bo = b_ref[L, 0:1, :]                  # (1, 1)
        y_ref[...] = jnp.sum(h * wo, axis=0, keepdims=True) + bo

    return kernel


def pack_params(params, n_in, n_hidden_nodes, n_hidden_layers):
    """Packs PyTorch-layout params [W1,b1,...,WL,bL,Wout,bout] into two f32 slabs."""
    L, H = n_hidden_layers, n_hidden_nodes
    k_max = max(n_in, H)
    w_all = jnp.zeros((L + 1, H, k_max), jnp.float32)
    b_all = jnp.zeros((L + 1, H, 1), jnp.float32)
    for l in range(L):
        w = jnp.asarray(params[2 * l], jnp.float32)          # (out, in)
        b = jnp.asarray(params[2 * l + 1], jnp.float32)      # (out,)
        w_all = w_all.at[l, :, : w.shape[1]].set(w)
        b_all = b_all.at[l, :, 0].set(b)
    wo = jnp.asarray(params[-2], jnp.float32).reshape(-1)    # (H,)
    bo = jnp.asarray(params[-1], jnp.float32).reshape(())    # ()
    w_all = w_all.at[L, :, 0].set(wo)
    b_all = b_all.at[L, 0, 0].set(bo)
    return w_all, b_all


def mlp_forward(x, params, *, n_hidden_layers, tile_batch=2048):
    """Runs the fused MLP Pallas kernel.

    x:      (N, n_in) float32  -- PyTorch layout, used as-is (no wrapper transpose/pad)
    params: flat list [W1, b1, ..., WL, bL, Wout, bout] in PyTorch Linear layout
    returns (N,) float32       -- matches `self.output_layer(x)[:, 0]`
    """
    n, n_in = x.shape
    n_hidden = params[0].shape[0]

    w_all, b_all = pack_params(params, n_in, n_hidden, n_hidden_layers)

    # Batch tile: multiple of 128 (lane width).  Large tiles amortize the ~0.35 us/step
    # overhead; per-step VMEM is only ~(n_in + H + 1) * TB * 4 B, far below the limit.
    tb = max(128, (tile_batch // 128) * 128)
    n_up = ((n + 127) // 128) * 128
    # Keep at least 2 grid steps when possible so "parallel" splits across both TCs (v7x).
    if tb >= n_up and n_up >= 256:
        tb = ((n_up // 2 + 127) // 128) * 128
    tb = min(tb, n_up)
    grid = (pl.cdiv(n, tb),)

    kernel = _make_mlp_kernel(n_hidden_layers, n_in, n_hidden)

    y2d = pl.pallas_call(
        kernel,
        out_shape=jax.ShapeDtypeStruct((1, n), jnp.float32),
        grid_spec=pltpu.PrefetchScalarGridSpec(
            num_scalar_prefetch=0,
            grid=grid,
            in_specs=[
                # x streamed over the batch; contiguous (tb, n_in) slab per step.
                pl.BlockSpec((tb, n_in), lambda i: (i, 0)),
                # tiny packed params: constant index_map keeps them VMEM-resident.
                pl.BlockSpec(w_all.shape, lambda i: (0, 0, 0)),
                pl.BlockSpec(b_all.shape, lambda i: (0, 0, 0)),
            ],
            # Lane-dense output blocks -> unmasked vst (except a possible ragged tail).
            out_specs=pl.BlockSpec((1, tb), lambda i: (0, i)),
        ),
        compiler_params=pltpu.CompilerParams(
            dimension_semantics=("parallel",)),
    )(x.astype(jnp.float32), w_all, b_all)

    return y2d[0]


def init_params(key, n_in, n_hidden_nodes, n_hidden_layers):
    """Deterministic synthetic parameters, PyTorch Linear shapes: W (out, in), b (out,)."""
    params = []
    dims_in = [n_in] + [n_hidden_nodes] * (n_hidden_layers - 1)
    dims_out = [n_hidden_nodes] * n_hidden_layers
    for d_in, d_out in zip(dims_in, dims_out):
        key, kw, kb = jax.random.split(key, 3)
        bound = 1.0 / jnp.sqrt(d_in)
        w = jax.random.uniform(kw, (d_out, d_in), jnp.float32, -bound, bound)
        b = jax.random.uniform(kb, (d_out,), jnp.float32, -bound, bound)
        params += [w, b]
    key, kw, kb = jax.random.split(key, 3)
    bound = 1.0 / jnp.sqrt(n_hidden_nodes)
    wo = jax.random.uniform(kw, (1, n_hidden_nodes), jnp.float32, -bound, bound)
    bo = jax.random.uniform(kb, (1,), jnp.float32, -bound, bound)
    params += [wo, bo]
    return params


def reference_forward(x, params, n_hidden_layers):
    """Pure-JAX reference matching the PyTorch forward (batch, features) layout."""
    h = x
    for layer in range(n_hidden_layers):
        w, b = params[2 * layer], params[2 * layer + 1]
        h = h @ w.T + b
        h = jnp.where(h > 0, h, NEG_SLOPE * h)
    wo, bo = params[-2], params[-1]
    y = h @ wo.T + bo
    return y[:, 0]


if __name__ == "__main__":
    # Shapes consistent with the module: Network(n_in=8, n_hidden_nodes=32,
    # n_hidden_layers=2); input u is (batch, n_in).  batch kept small; the wrapper
    # auto-splits it into a 2-step grid so both TCs get work on v7x.
    n_in = 8
    n_hidden_nodes = 32
    n_hidden_layers = 2
    batch = 512

    key = jax.random.PRNGKey(0)
    key, kx = jax.random.split(key)
    u = jax.random.normal(kx, (batch, n_in), jnp.float32)

    params = init_params(key, n_in, n_hidden_nodes, n_hidden_layers)

    y = mlp_forward(u, params, n_hidden_layers=n_hidden_layers, tile_batch=2048)
    y = jax.block_until_ready(y)

    y_ref = reference_forward(u, params, n_hidden_layers)
    assert y.shape == (batch,)
    assert jnp.allclose(y, y_ref, atol=1e-4, rtol=1e-4), "mismatch vs JAX reference"

    print("KERNEL_OK")
</pallas_src>

<mosaic_0001>
module attributes {stable_mosaic.version = 11 : i64} {
  func.func @kernel(%arg0: i32, %arg1: memref<256x8xf32, #tpu.memory_space<vmem>>, %arg2: memref<3x32x32xf32, #tpu.memory_space<vmem>>, %arg3: memref<3x32x1xf32, #tpu.memory_space<vmem>>, %arg4: memref<1x256xf32, #tpu.memory_space<vmem>>) attributes {dimension_semantics = [#tpu.dimension_semantics<parallel>], iteration_bounds = array<i64: 2>, scalar_prefetch = 0 : i64, scratch_operands = 0 : i64, tpu.core_type = #tpu.core_type<tc>, window_params = [{transform_indices = @transform_0, window_bounds = array<i64: 256, 8>}, {pipeline_mode = #tpu.pipeline_mode<synchronous>, transform_indices = @transform_1, window_bounds = array<i64: 3, 32, 32>}, {pipeline_mode = #tpu.pipeline_mode<synchronous>, transform_indices = @transform_2, window_bounds = array<i64: 3, 32, 1>}, {transform_indices = @transform_3, window_bounds = array<i64: 1, 256>}]} {
    %c0 = arith.constant 0 : index
    %c0_0 = arith.constant 0 : index
    %c0_1 = arith.constant 0 : index
    %0 = vector.load %arg2[%c0, %c0_0, %c0_1] : memref<3x32x32xf32, #tpu.memory_space<vmem>>, vector<1x32x8xf32>
    %1 = vector.shape_cast %0 : vector<1x32x8xf32> to vector<32x8xf32>
    %c0_2 = arith.constant 0 : index
    %c0_3 = arith.constant 0 : index
    %2 = vector.load %arg1[%c0_2, %c0_3] : memref<256x8xf32, #tpu.memory_space<vmem>>, vector<256x8xf32>
    %3 = tpu.transpose %2, [1, 0] : vector<256x8xf32> -> vector<8x256xf32>
    %cst = arith.constant dense<0.000000e+00> : vector<32x256xf32>
    %4 = tpu.matmul %1, %3, %cst {dimension_numbers = #tpu.dot_dimension_numbers<[1], [0], [0], [1], [0, 0, 1, 1], [], []>} : vector<32x8xf32>, vector<8x256xf32>, vector<32x256xf32> -> vector<32x256xf32>
    %c0_4 = arith.constant 0 : index
    %c0_5 = arith.constant 0 : index
    %c0_6 = arith.constant 0 : index
    %5 = vector.load %arg3[%c0_4, %c0_5, %c0_6] : memref<3x32x1xf32, #tpu.memory_space<vmem>>, vector<1x32x1xf32>
    %6 = vector.shape_cast %5 : vector<1x32x1xf32> to vector<32x1xf32>
    %7 = vector.broadcast %6 : vector<32x1xf32> to vector<32x256xf32>
    %8 = arith.addf %4, %7 : vector<32x256xf32>
    %cst_7 = arith.constant 0.00999999977 : f32
    %9 = vector.broadcast %cst_7 : f32 to vector<32x256xf32>
    %10 = arith.mulf %9, %8 : vector<32x256xf32>
    %11 = arith.maximumf %8, %10 : vector<32x256xf32>
    %c1 = arith.constant 1 : index
    %c0_8 = arith.constant 0 : index
    %c0_9 = arith.constant 0 : index
    %12 = vector.load %arg2[%c1, %c0_8, %c0_9] : memref<3x32x32xf32, #tpu.memory_space<vmem>>, vector<1x32x32xf32>
    %13 = vector.shape_cast %12 : vector<1x32x32xf32> to vector<32x32xf32>
    %cst_10 = arith.constant dense<0.000000e+00> : vector<32x256xf32>
    %14 = tpu.matmul %13, %11, %cst_10 {dimension_numbers = #tpu.dot_dimension_numbers<[1], [0], [0], [1], [0, 0, 1, 1], [], []>} : vector<32x32xf32>, vector<32x256xf32>, vector<32x256xf32> -> vector<32x256xf32>
    %c1_11 = arith.constant 1 : index
    %c0_12 = arith.constant 0 : index
    %c0_13 = arith.constant 0 : index
    %15 = vector.load %arg3[%c1_11, %c0_12, %c0_13] : memref<3x32x1xf32, #tpu.memory_space<vmem>>, vector<1x32x1xf32>
    %16 = vector.shape_cast %15 : vector<1x32x1xf32> to vector<32x1xf32>
    %17 = vector.broadcast %16 : vector<32x1xf32> to vector<32x256xf32>
    %18 = arith.addf %14, %17 : vector<32x256xf32>
    %cst_14 = arith.constant 0.00999999977 : f32
    %19 = vector.broadcast %cst_14 : f32 to vector<32x256xf32>
    %20 = arith.mulf %19, %18 : vector<32x256xf32>
    %21 = arith.maximumf %18, %20 : vector<32x256xf32>
    %c2 = arith.constant 2 : index
    %c0_15 = arith.constant 0 : index
    %c0_16 = arith.constant 0 : index
    %22 = vector.load %arg2[%c2, %c0_15, %c0_16] : memref<3x32x32xf32, #tpu.memory_space<vmem>>, vector<1x32x1xf32>
    %23 = vector.shape_cast %22 : vector<1x32x1xf32> to vector<32x1xf32>
    %c2_17 = arith.constant 2 : index
    %c0_18 = arith.constant 0 : index
    %c0_19 = arith.constant 0 : index
    %24 = vector.load %arg3[%c2_17, %c0_18, %c0_19] : memref<3x32x1xf32, #tpu.memory_space<vmem>>, vector<1x1x1xf32>
    %25 = vector.shape_cast %24 : vector<1x1x1xf32> to vector<1x1xf32>
    %26 = vector.broadcast %23 : vector<32x1xf32> to vector<32x256xf32>
    %27 = arith.mulf %21, %26 : vector<32x256xf32>
    %cst_20 = arith.constant dense<0.000000e+00> : vector<256xf32>
    %28 = vector.multi_reduction <add>, %27, %cst_20 [0] : vector<32x256xf32> to vector<256xf32>
    %29 = vector.shape_cast %28 : vector<256xf32> to vector<1x256xf32>
    %30 = vector.broadcast %25 : vector<1x1xf32> to vector<1x256xf32>
    %31 = arith.addf %29, %30 : vector<1x256xf32>
    %c0_21 = arith.constant 0 : index
    %c0_22 = arith.constant 0 : index
    %32 = vector.load %arg4[%c0_21, %c0_22] : memref<1x256xf32, #tpu.memory_space<vmem>>, vector<1x256xf32>
    tpu.vector_store %arg4[%c0_21, %c0_22], %31 {strides = array<i32>} : memref<1x256xf32, #tpu.memory_space<vmem>>, vector<1x256xf32>,
    return
  }
  func.func @transform_0(%arg0: i32) -> (i32, i32) {
    %c0_i32 = arith.constant 0 : i32
    %c0_i32_0 = arith.constant 0 : i32
    return %arg0, %c0_i32 : i32, i32
  }
  func.func @transform_1(%arg0: i32) -> (i32, i32, i32) {
    %c0_i32 = arith.constant 0 : i32
    %c0_i32_0 = arith.constant 0 : i32
    %c0_i32_1 = arith.constant 0 : i32
    %c0_i32_2 = arith.constant 0 : i32
    return %c0_i32, %c0_i32_0, %c0_i32_1 : i32, i32, i32
  }
  func.func @transform_2(%arg0: i32) -> (i32, i32, i32) {
    %c0_i32 = arith.constant 0 : i32
    %c0_i32_0 = arith.constant 0 : i32
    %c0_i32_1 = arith.constant 0 : i32
    %c0_i32_2 = arith.constant 0 : i32
    return %c0_i32, %c0_i32_0, %c0_i32_1 : i32, i32, i32
  }
  func.func @transform_3(%arg0: i32) -> (i32, i32) {
    %c0_i32 = arith.constant 0 : i32
    %c0_i32_0 = arith.constant 0 : i32
    return %c0_i32, %arg0 : i32, i32
  }
}

</mosaic_0001>

<bundles_post_ra>
// kernel: tpu_custom_call.1
= control target key start
LH: loop header
LB: loop body
LE: loop exit
PB: predicated region body
PF: predicated region fallthrough
CT: control target
= control target key end

     0   :  { %8 = vsyncpa [#allocation3], 0  ;;  %s1291_s0 = inlined_call_operand.vmem [shape: f32[512,8], index: 0, kind: input, shape index: {}]   ;;  %s1292_s1 = inlined_call_operand.vmem [shape: f32[3,32,32], index: 1, kind: input, shape index: {}]   ;;  %s1293_s2 = inlined_call_operand.vmem [shape: f32[3,32,1], index: 2, kind: input, shape index: {}]   ;;  %s1294_s3 = inlined_call_operand.hbm [shape: f32[1,512], index: 3, kind: output, shape index: {}]  }
   0x1   :  { %10 = vsyncpa [#allocation3 + $0x1], 0  ;;  %s1045_s12 = smov 0   ;;  %s1047_s13 = smov 0  }
   0x2   :  { %s1049_s14 = smov 0   ;;  %s1051_s15 = smov 0  }
   0x3 LB: > { %s750_s16 = sadd.s32 4294967295, %s1019_s15   ;;  %s751_s17 = sadd.s32 4294967294, %s1019_s15   ;;  %s1019_s15 = sphi %s1051_s15, %s1302_s15   ;;  %s1015_s14 = sphi %s1049_s14, %s1301_s14   ;;  %s1011_s13 = sphi %s1047_s13, %s1300_s13   ;;  %s1007_s12 = sphi %s1045_s12, %s1299_s12  }
   0x4   : > { %s1068_s18 = sadd.s32 1, %s1019_s15   ;;  %s91_s19 = sadd.s32 1, %s1015_s14 }
   0x5   : > { %s88_s20 = ssub.s32 %s1019_s15, %s1068_s18  ;;  %p101_p0 = scmp.ne.s32.totalorder %s1015_s14, %s1011_s13 }
   0x6   : > { %p89_p1 = scmp.eq.s32.totalorder %s88_s20, 0  ;;  %p102_p2 = scmp.eq.s32.totalorder %s750_s16, 1 }
   0x7   : > { %p107_p3 = scmp.ne.s32.totalorder %s1011_s13, %s1007_s12  ;;  %p108_p4 = scmp.eq.s32.totalorder %s751_s17, 1 }
   0x8   : > { %s1078_s21 = scalar_select %p89_p1, %s1015_s14, %s91_s19  }
   0x9   : > { %p1080_p5 = por %p102_p2, %p101_p0  ;;  %p1084_p6 = por %p108_p4, %p107_p3 }
   0xa   : > { %p754_p7 = scmp.ge.s32.totalorder %s1019_s15, 1  ;;  %p141_p8 = scmp.lt.s32.totalorder %s1019_s15, 3 }
   0xc   : > { %p142_p9 = pnand %p754_p7, %p141_p8 }
   0xd   : > { %s1090_s24 = sshll.u32 (!%p142_p9), %s750_s16, 5  ;;  %vm232_vm0 = vcmask (!%p142_p9), 64512   ;;  %v1095_v0 = vld [vmem:[%s1292_s1] sm:$0xff] (!%p142_p9)  ;;  %v1021_v1 = vmov (!%p142_p9), 0   ;;  %v210_v3 = vld [vmem:[%s1293_s2 + $0x10] sm:$0xff] (!%p142_p9)  ;;  %v209_v4 = vld [vmem:[%s1293_s2 + $0x8] sm:$0xff] (!%p142_p9) }
   0xe   : > { %145 = sbr.rel (%p142_p9) target bundleno = 598 (0x256), region = 32  ;;  %p166_p10 = scmp.lt.s32.totalorder (!%p142_p9), %s1090_s24, 63  ;;  %849 = vmatprep.mubr.msk.f32.mxu0 (!%p142_p9), %vm232_vm0, %v1095_v0  ;;  %955 = vset.pattern.permute.xlu0 (!%p142_p9), %v1021_v1  ;;  %v208_v2 = vld [vmem:[%s1293_s2] sm:$0xff] (!%p142_p9)  ;;  %v211_v5 = vld [vmem:[%s1293_s2 + $0x18] sm:$0xff] (!%p142_p9)  ;;  %vm1120_vm1 = vmpackc.low (!%p142_p9), %vm232_vm0, %vm232_vm0  ;;  %vm476_vm2 = vcmask (!%p142_p9), 261120  }
   0xf   : > { %214 = vperm.xlu0 (!%p142_p9), %955, %v208_v2   ;;  %956 = vset.pattern.permute.xlu1 (!%p142_p9), %v1021_v1  ;;  %v798_v7 = vld [vmem:[%s1293_s2 + $0x20] sm:$0xff] (!%p142_p9)  ;;  %v799_v8 = vld [vmem:[%s1293_s2 + $0x28] sm:$0xff] (!%p142_p9)  ;;  %v800_v18 = vld [vmem:[%s1293_s2 + $0x30] sm:$0xff] (!%p142_p9)  ;;  %s1249_s25 = scalar_lea.hbm (!%p142_p9), %s1294_s3, %s1090_s24  ;;  %s1024_s27 = smov (!%p142_p9), [#allocation2]  }
  0x10   : > { %224 = vperm.xlu1 (!%p142_p9), %956, %v210_v3   ;;  %v801_v21 = vld [vmem:[%s1293_s2 + $0x38] sm:$0xff] (!%p142_p9)  ;;  %v806_v25 = vld [vmem:[%s1292_s1 + $0x40] sm:$0xff] (!%p142_p9)  ;;  %v807_v27 = vld [vmem:[%s1292_s1 + $0x48] sm:$0xff] (!%p142_p9)  ;;  %s961_s28 = sshll.u32 (!%p142_p9), %s1024_s27, 4  ;;  %s962_s28 = int_to_ptr.vmem [resolvable:$false] %s961_s28 }
  0x11   : > { %v808_v28 = vld [vmem:[%s1292_s1 + $0x50] sm:$0xff] (!%p142_p9)  ;;  %v809_v31 = vld [vmem:[%s1292_s1 + $0x58] sm:$0xff] (!%p142_p9)  ;;  %v810_v35 = vld [vmem:[%s1293_s2 + $0x40] sm:$0x1] (!%p142_p9)  ;;  %s963_s29 = scalar_lea.vmem (!%p142_p9), %s962_s28, 64 }
  0x12   : > { %v173_v1 = vld [vmem:[%s1292_s1 + $0x8] sm:$0xff] (!%p142_p9)  ;;  %v174_v2 = vld [vmem:[%s1292_s1 + $0x10] sm:$0xff] (!%p142_p9)  ;;  %v175_v3 = vld [vmem:[%s1292_s1 + $0x18] sm:$0xff] (!%p142_p9) }
  0x13   : > { %219 = vperm.xlu0 (!%p142_p9), %955, %v209_v4  }
  0x14   : > { %229 = vperm.xlu1 (!%p142_p9), %956, %v211_v5  }
  0x15   : > { %s167_s4 = scalar_select %p166_p10, %s1090_s24, 63 }
  0x17   : > { %s757_s9 = sshll.u32 %s167_s4, 3  ;;  %458 = vperm.xlu0 %955, %v798_v7  }
  0x18   : > { %s1116_s16 = scalar_lea.vmem %s1291_s0, %s757_s9  ;;  %463 = vperm.xlu1 %956, %v799_v8   ;;  %s162_s9 = sand.u32 1, %s1011_s13  }
  0x19   : > { %v192_v9 = vld [vmem:[%s1116_s16 + $0x80] sm:$0xff]  ;;  %v193_v10 = vld [vmem:[%s1116_s16 + $0x88] sm:$0xff]  ;;  %v194_v14 = vld [vmem:[%s1116_s16 + $0x90] sm:$0xff]  ;;  %s755_s10 = sshll.u32 %s162_s9, 1  ;;  %s678_s26 = scalar_lea.sflag [#allocation3], %s162_s9 }
  0x1a   : > { %v176_v11 = vld [vmem:[%s1116_s16] sm:$0xff]  ;;  %v857_v12 = vpack.c.bf16 %v193_v10, %v192_v9  ;;  %v177_v13 = vld [vmem:[%s1116_s16 + $0x8] sm:$0xff]  ;;  %v195_v15 = vld [vmem:[%s1116_s16 + $0x98] sm:$0xff]  ;;  %s164_s11 = scalar_lea.vmem [#allocation2], %s755_s10 }
  0x1b   : > { %v860_v16 = vpack.c.bf16 %v177_v13, %v176_v11  ;;  %v863_v17 = vpack.c.bf16 %v195_v15, %v194_v14  ;;  %v178_v19 = vld [vmem:[%s1116_s16 + $0x10] sm:$0xff]  ;;  %v179_v20 = vld [vmem:[%s1116_s16 + $0x18] sm:$0xff]  ;;  %v196_v22 = vld [vmem:[%s1116_s16 + $0xa0] sm:$0xff]  ;;  %468 = vperm.xlu0 %955, %v800_v18   ;;  %s692_s17 = sshll.u32 %s164_s11, 4  ;;  %s1251_s17 = int_to_ptr.vmem [resolvable:$true] %s692_s17 }
  0x1c   : > { %859 = vmatprep.subr.msk.bf16.mxu0 %vm1120_vm1, %v857_v12  ;;  %v197_v23 = vld [vmem:[%s1116_s16 + $0xa8] sm:$0xff]  ;;  %v866_v24 = vpack.c.bf16 %v179_v20, %v178_v19  ;;  %473 = vperm.xlu1 %956, %v801_v21   ;;  %v180_v29 = vld [vmem:[%s1116_s16 + $0x20] sm:$0xff]  ;;  %v198_v32 = vld [vmem:[%s1116_s16 + $0xb0] sm:$0xff]  ;;  %p964_p0 = scmp.lt.s32.totalorder %s1251_s17, %s962_s28 }
  0x1d   : > { %862 = vmatpush3.bf16.xpose.msk.msra.mxu0 %vm1120_vm1, %v860_v16  ;;  %v869_v26 = vpack.c.bf16 %v197_v23, %v196_v22  ;;  %v181_v30 = vld [vmem:[%s1116_s16 + $0x28] sm:$0xff]  ;;  %v199_v33 = vld [vmem:[%s1116_s16 + $0xb8] sm:$0xff]  ;;  %v182_v37 = vld [vmem:[%s1116_s16 + $0x30] sm:$0xff] }
  0x1e   : > { %865 = vmatprep.subr.msk.bf16.mxu0 %vm1120_vm1, %v863_v17  ;;  %v872_v34 = vpack.c.bf16 %v181_v30, %v180_v29  ;;  %v875_v36 = vpack.c.bf16 %v199_v33, %v198_v32  ;;  %v183_v38 = vld [vmem:[%s1116_s16 + $0x38] sm:$0xff]  ;;  %v200_v39 = vld [vmem:[%s1116_s16 + $0xc0] sm:$0xff]  ;;  %v201_v40 = vld [vmem:[%s1116_s16 + $0xc8] sm:$0xff] }
  0x1f   : > { %603 = vperm.xlu0 %955, %v806_v25   ;;  %v878_v41 = vpack.c.bf16 %v183_v38, %v182_v37  ;;  %v881_v42 = vpack.c.bf16 %v201_v40, %v200_v39  ;;  %v184_v43 = vld [vmem:[%s1116_s16 + $0x40] sm:$0xff]  ;;  %v185_v44 = vld [vmem:[%s1116_s16 + $0x48] sm:$0xff]  ;;  %v202_v45 = vld [vmem:[%s1116_s16 + $0xd0] sm:$0xff] }
  0x20   : > { %608 = vperm.xlu1 %956, %v807_v27   ;;  %v203_v46 = vld [vmem:[%s1116_s16 + $0xd8] sm:$0xff]  ;;  %v884_v47 = vpack.c.bf16 %v185_v44, %v184_v43  ;;  %v186_v49 = vld [vmem:[%s1116_s16 + $0x50] sm:$0xff]  ;;  %v204_v51 = vld [vmem:[%s1116_s16 + $0xe0] sm:$0xff] }
  0x21   : > { %v887_v48 = vpack.c.bf16 %v203_v46, %v202_v45  ;;  %v187_v50 = vld [vmem:[%s1116_s16 + $0x58] sm:$0xff]  ;;  %v205_v52 = vld [vmem:[%s1116_s16 + $0xe8] sm:$0xff]  ;;  %v188_v55 = vld [vmem:[%s1116_s16 + $0x60] sm:$0xff] }
  0x22   : > { %v890_v53 = vpack.c.bf16 %v187_v50, %v186_v49  ;;  %v893_v54 = vpack.c.bf16 %v205_v52, %v204_v51  ;;  %v189_v56 = vld [vmem:[%s1116_s16 + $0x68] sm:$0xff]  ;;  %v206_v57 = vld [vmem:[%s1116_s16 + $0xf0] sm:$0xff]  ;;  %v207_v58 = vld [vmem:[%s1116_s16 + $0xf8] sm:$0xff] }
  0x23   : > { %613 = vperm.xlu0 %955, %v808_v28   ;;  %v896_v59 = vpack.c.bf16 %v189_v56, %v188_v55  ;;  %v899_v60 = vpack.c.bf16 %v207_v58, %v206_v57  ;;  %v190_v61 = vld [vmem:[%s1116_s16 + $0x70] sm:$0xff]  ;;  %v191_v62 = vld [vmem:[%s1116_s16 + $0x78] sm:$0xff]  ;;  %v794_v44 = vld [vmem:[%s1292_s1 + $0x20] sm:$0xff]  ;;  %s957_s16 = scalar_lea.vmem %s1251_s17, 32 }
  0x24   : > { %618 = vperm.xlu1 %956, %v809_v31   ;;  %v902_v63 = vpack.c.bf16 %v191_v62, %v190_v61  ;;  %v795_v45 = vld [vmem:[%s1292_s1 + $0x28] sm:$0xff]  ;;  %v796_v46 = vld [vmem:[%s1292_s1 + $0x30] sm:$0xff]  ;;  %p958_p11 = scmp.ne.s32.totalorder %s1251_s17, %s957_s16  ;;  %p965_p1 = scmp.lt.s32.totalorder %s963_s29, %s957_s16 }
  0x25   : > { %868 = vmatpush3.bf16.xpose.msk.msra.mxu0 %vm1120_vm1, %v866_v24 }
  0x26   : > { %871 = vmatprep.subr.msk.bf16.mxu0 %vm1120_vm1, %v869_v26  ;;  %p959_p12 = pnand %p958_p11, %p1080_p5  ;;  %p966_p2 = por %p965_p1, %p964_p0 }
  0x27   : > { %649 = vperm.xlu0 %955, %v810_v35  }
  0x28   : > { %p960_p13 = pneg %p959_p12 }
  0x2a   : > { %p967_p3 = pnand %p966_p2, %p960_p13 }
  0x2d   : > { %874 = vmatpush3.bf16.xpose.msk.msra.mxu0 %vm1120_vm1, %v872_v34 }
  0x2e   : > { %877 = vmatprep.subr.msk.bf16.mxu0 %vm1120_vm1, %v875_v36 }
  0x35   : > { %880 = vmatpush3.bf16.xpose.msk.msra.mxu0 %vm1120_vm1, %v878_v41 }
  0x36   : > { %883 = vmatprep.subr.msk.bf16.mxu0 %vm1120_vm1, %v881_v42 }
  0x3d   : > { %886 = vmatpush3.bf16.xpose.msk.msra.mxu0 %vm1120_vm1, %v884_v47  ;;  %v797_v47 = vld [vmem:[%s1292_s1 + $0x38] sm:$0xff] }
  0x3e   : > { %889 = vmatprep.subr.msk.bf16.mxu0 %vm1120_vm1, %v887_v48 }
  0x45   : > { %892 = vmatpush3.bf16.xpose.msk.msra.mxu0 %vm1120_vm1, %v890_v53 }
  0x46   : > { %895 = vmatprep.subr.msk.bf16.mxu0 %vm1120_vm1, %v893_v54 }
  0x4d   : > { %898 = vmatpush3.bf16.xpose.msk.msra.mxu0 %vm1120_vm1, %v896_v59 }
  0x4e   : > { %901 = vmatprep.subr.msk.bf16.mxu0 %vm1120_vm1, %v899_v60 }
  0x55   : > { %904 = vmatpush3.bf16.xpose.msk.msra.mxu0 %vm1120_vm1, %v902_v63 }
  0x5c   : > { %850 = vmatmul.mubr.msk.f32.vlgmr.msra.gmra.mrb[0].mxu0 %vm232_vm0, %v1095_v0  ;;  %v1022_v0 = vmov 0.0  }
  0x5d   : > { %851 = vmatprep.mubr.msk.f32.mxu0 %vm232_vm0, %v173_v1  ;;  %553 = vmatprep.mubr.f32.mxu1 %v1022_v0 }
  0x60   : > { %852 = vmatmul.mubr.msk.f32.gmra.mrb[2].mxu0 %vm232_vm0, %v173_v1 }
  0x61   : > { %853 = vmatprep.mubr.msk.f32.mxu0 %vm232_vm0, %v174_v2 }
  0x64   : > { %854 = vmatmul.mubr.msk.f32.gmra.mrb[4].mxu0 %vm232_vm0, %v174_v2 }
  0x65   : > { %855 = vmatprep.mubr.msk.f32.mxu0 %vm232_vm0, %v175_v3 }
  0x68   : > { %856 = vmatmul.mubr.msk.f32.gmra.mrb[6].mxu0 %vm232_vm0, %v175_v3 }
  0x8e   : > { %v215_v4 = vpop.permute.xlu0 %214 }
  0x8f   : > { %v225_v14 = vpop.permute.xlu1 %224 }
  0x92   : > { %v220_v9 = vpop.permute.xlu0 %219 }
  0x93   : > { %v230_v28 = vpop.permute.xlu1 %229 }
  0x96   : > { %v459_v48 = vpop.permute.xlu0 %458 }
  0x97   : > { %v464_v49 = vpop.permute.xlu1 %463 }
  0x9a   : > { %v469_v53 = vpop.permute.xlu0 %468 }
  0x9b   : > { %v474_v56 = vpop.permute.xlu1 %473 }
  0x9e   : > { %v604_v1 = vpop.permute.xlu0 %603 }
 0x12f   : > { %v407_v5 = vpop.f32.mrb[0].mxu0 }
 0x130   : > { %v408_v6 = vadd.f32 %v407_v5, %v215_v4  ;;  %v409_v7 = vpop.f32.mrb[1].mxu0 }
 0x131   : > { %v410_v8 = vadd.f32 %v409_v7, %v215_v4  ;;  %v609_v7 = vpop.permute.xlu1 %608 }
 0x132   : > { %v430_v11 = vmul.f32 0.01, %v408_v6 }
 0x133   : > { %v413_v10 = vpop.f32.mrb[2].mxu0  ;;  %v431_v15 = vmul.f32 0.01, %v410_v8 }
 0x134   : > { %v414_v12 = vadd.f32 %v413_v10, %v220_v9  ;;  %v415_v13 = vpop.f32.mrb[3].mxu0  ;;  %v438_v20 = vmax.f32 %v408_v6, %v430_v11 }
 0x135   : > { %v416_v16 = vadd.f32 %v415_v13, %v220_v9  ;;  %v439_v25 = vmax.f32 %v410_v8, %v431_v15 }
 0x136   : > { %v432_v17 = vmul.f32 0.01, %v414_v12 }
 0x137   : > { %v433_v18 = vmul.f32 0.01, %v416_v16  ;;  %v419_v19 = vpop.f32.mrb[4].mxu0 }
 0x138   : > { %v440_v21 = vmax.f32 %v414_v12, %v432_v17  ;;  %v420_v22 = vadd.f32 %v419_v19, %v225_v14  ;;  %v421_v23 = vpop.f32.mrb[5].mxu0 }
 0x139   : > { %v422_v24 = vadd.f32 %v421_v23, %v225_v14  ;;  %v441_v26 = vmax.f32 %v416_v16, %v433_v18 }
 0x13a   : > { %v907_v27 = vpack.c.bf16 %v440_v21, %v438_v20  ;;  %v434_v31 = vmul.f32 0.01, %v420_v22  ;;  %v614_v21 = vpop.permute.xlu0 %613 }
 0x13b   : > { %v425_v29 = vpop.f32.mrb[6].mxu0  ;;  %v905_v30 = vpack.c.bf16 %v441_v26, %v439_v25  ;;  %v435_v34 = vmul.f32 0.01, %v422_v24 }
 0x13c   : > { %v426_v32 = vadd.f32 %v425_v29, %v230_v28  ;;  %v427_v33 = vpop.f32.mrb[7].mxu0  ;;  %v442_v38 = vmax.f32 %v420_v22, %v434_v31  ;;  %v619_v31 = vpop.permute.xlu1 %618 }
 0x13d   : > { %v428_v35 = vadd.f32 %v427_v33, %v230_v28  ;;  %906 = vmatprep.subr.bf16.mxu1 %v905_v30  ;;  %v443_v40 = vmax.f32 %v422_v24, %v435_v34 }
 0x13e   : > { %v436_v36 = vmul.f32 0.01, %v426_v32  ;;  %908 = vmatpush1.bf16.msra.mxu1 %v907_v27 }
 0x13f   : > { %v437_v37 = vmul.f32 0.01, %v428_v35 }
 0x140   : > { %v444_v39 = vmax.f32 %v426_v32, %v436_v36 }
 0x141   : > { %v445_v41 = vmax.f32 %v428_v35, %v437_v37 }
 0x142   : > { %v911_v42 = vpack.c.bf16 %v444_v39, %v442_v38 }
 0x143   : > { %v909_v43 = vpack.c.bf16 %v445_v41, %v443_v40 }
 0x145   : > { %910 = vmatprep.subr.bf16.mxu1 %v909_v43 }
 0x146   : > { %912 = vmatpush1.bf16.msra.mxu1 %v911_v42 }
 0x149   : > { %802 = vmatmul.mubr.msk.f32.vlgmr.msra.gmra.mrb[0].mxu1 %vm476_vm2, %v794_v44  ;;  %v1023_v44 = vmov 1966171168  }
 0x14a   : > { %559 = vmatprep.mubr.f32.mxu1 %v1022_v0 }
 0x14d   : > { %803 = vmatmul.mubr.msk.f32.gmra.mrb[2].mxu1 %vm476_vm2, %v795_v45  ;;  %v658_v45 = vunpack.c.l.s4 %v1023_v44 }
 0x14e   : > { %565 = vmatprep.mubr.f32.mxu1 %v1022_v0 }
 0x151   : > { %804 = vmatmul.mubr.msk.f32.gmra.mrb[4].mxu1 %vm476_vm2, %v796_v46  ;;  %v660_v46 = vlaneseq }
 0x152   : > { %571 = vmatprep.mubr.f32.mxu1 %v1022_v0 }
 0x153   : > { %vm674_vm3 = vcmp.lt.s32.totalorder %v660_v46, 256 }
 0x155   : > { %805 = vmatmul.mubr.msk.f32.gmra.mrb[6].mxu1 %vm476_vm2, %v797_v47 }
 0x21c   : > { %v555_v50 = vpop.f32.mrb[0].mxu1 }
 0x21d   : > { %v556_v51 = vadd.f32 %v555_v50, %v459_v48  ;;  %v557_v52 = vpop.f32.mrb[1].mxu1 }
 0x21e   : > { %v558_v54 = vadd.f32 %v557_v52, %v459_v48  ;;  %v661_v52 = vshrl.u32 %v660_v46, 7 }
 0x21f   : > { %v578_v55 = vmul.f32 0.01, %v556_v51 }
 0x220   : > { %v579_v57 = vmul.f32 0.01, %v558_v54  ;;  %v561_v58 = vpop.f32.mrb[2].mxu1 }
 0x221   : > { %v562_v59 = vadd.f32 %v561_v58, %v464_v49  ;;  %v563_v60 = vpop.f32.mrb[3].mxu1  ;;  %v586_v62 = vmax.f32 %v556_v51, %v578_v55  ;;  %v659_v51 = vunpack.c.0.s8 %v658_v45 }
 0x222   : > { %v564_v61 = vadd.f32 %v563_v60, %v464_v49  ;;  %v587_v2 = vmax.f32 %v558_v54, %v579_v57  ;;  %v650_v54 = vpop.permute.xlu0 %649 }
 0x223   : > { %v580_v63 = vmul.f32 0.01, %v562_v59  ;;  %v621_v10 = vmul.f32 %v604_v1, %v586_v62  ;;  %v662_v58 = vsub.s32 %v659_v51, %v661_v52 }
 0x224   : > { %v581_v3 = vmul.f32 0.01, %v564_v61  ;;  %v567_v0 = vpop.f32.mrb[4].mxu1  ;;  %v622_v13 = vmul.f32 %v604_v1, %v587_v2 }
 0x225   : > { %v588_v4 = vmax.f32 %v562_v59, %v580_v63  ;;  %v568_v5 = vadd.f32 %v567_v0, %v469_v53  ;;  %v569_v6 = vpop.f32.mrb[5].mxu1 }
 0x226   : > { %v589_v8 = vmax.f32 %v564_v61, %v581_v3  ;;  %v570_v9 = vadd.f32 %v569_v6, %v469_v53 }
 0x227   : > { %v623_v11 = vmul.f32 %v609_v7, %v588_v4  ;;  %v582_v12 = vmul.f32 0.01, %v568_v5 }
 0x228   : > { %v624_v14 = vmul.f32 %v609_v7, %v589_v8  ;;  %v583_v15 = vmul.f32 0.01, %v570_v9  ;;  %v573_v16 = vpop.f32.mrb[6].mxu1 }
 0x229   : > { %v629_v17 = vadd.f32 %v623_v11, %v621_v10  ;;  %v590_v18 = vmax.f32 %v568_v5, %v582_v12  ;;  %v574_v19 = vadd.f32 %v573_v16, %v474_v56  ;;  %v575_v20 = vpop.f32.mrb[7].mxu1 }
 0x22a   : > { %v638_v22 = vadd.f32 %v624_v14, %v622_v13  ;;  %v591_v23 = vmax.f32 %v570_v9, %v583_v15  ;;  %v576_v24 = vadd.f32 %v575_v20, %v474_v56 }
 0x22b   : > { %v625_v25 = vmul.f32 %v614_v21, %v590_v18  ;;  %v584_v26 = vmul.f32 0.01, %v574_v19 }
 0x22c   : > { %v626_v27 = vmul.f32 %v614_v21, %v591_v23  ;;  %v585_v28 = vmul.f32 0.01, %v576_v24 }
 0x22d   : > { %v630_v29 = vadd.f32 %v629_v17, %v625_v25  ;;  %v592_v30 = vmax.f32 %v574_v19, %v584_v26 }
 0x22e   : > { %v639_v32 = vadd.f32 %v638_v22, %v626_v27  ;;  %v593_v33 = vmax.f32 %v576_v24, %v585_v28 }
 0x22f   : > { %v627_v34 = vmul.f32 %v619_v31, %v592_v30 }
 0x230   : > { %v628_v35 = vmul.f32 %v619_v31, %v593_v33 }
 0x231   : > { %v631_v36 = vadd.f32 %v630_v29, %v627_v34 }
 0x232   : > { %v640_v37 = vadd.f32 %v639_v32, %v628_v35 }
 0x233   : > { %v632_v38 = vrot.slane %v631_v36, 4 }
 0x234   : > { %v641_v39 = vrot.slane %v640_v37, 4 }
 0x235   : > { %v633_v40 = vadd.f32 %v632_v38, %v631_v36 }
 0x236   : > { %v642_v41 = vadd.f32 %v641_v39, %v640_v37 }
 0x237   : > { %v634_v42 = vrot.slane %v633_v40, 2 }
 0x238   : > { %v643_v43 = vrot.slane %v642_v41, 2 }
 0x239   : > { %v635_v47 = vadd.f32 %v634_v42, %v633_v40 }
 0x23a   : > { %v644_v48 = vadd.f32 %v643_v43, %v642_v41 }
 0x23b   : > { %v636_v49 = vrot.slane %v635_v47, 1 }
 0x23c   : > { %v645_v50 = vrot.slane %v644_v48, 1 }
 0x23d   : > { %v637_v53 = vadd.f32 %v636_v49, %v635_v47 }
 0x23e   : > { %v646_v55 = vadd.f32 %v645_v50, %v644_v48 }
 0x23f   : > { %v652_v56 = vadd.f32 %v650_v54, %v637_v53 }
 0x240   : > { %v653_v57 = vadd.f32 %v650_v54, %v646_v55 }
 0x242   : > { %v656_v59 = vcombine.low %v652_v56, %v653_v57 }
 0x244   : > { %v663_v60 = vrot.slane %v656_v59, %v662_v58 }
 0x246   : > { %v670_v61 = vrot.slane %v663_v60, %v662_v58 }
 0x248   : > { %676 = vst.msk [vmem:[%s164_s11] sm:$0x3] %vm674_vm3, %v670_v61 }
 0x249   : > { %970 = shalt.err (!%p967_p3)
}
 0x24a   : > { %s971_s24 = scalar_lea.hbm %s1249_s25, 32  ;;  %s975_s5 = scalar_lea.hbm %s1294_s3, 64 }
 0x24b   : > { %p972_p4 = scmp.ne.s32.totalorder %s1249_s25, %s971_s24  ;;  %p976_p9 = scmp.lt.u32.totalorder %s1249_s25, %s1294_s3 }
 0x24c   : > { %p977_p10 = scmp.lt.u32.totalorder %s975_s5, %s971_s24  ;;  %p979_p12 = scmp.lt.u32.totalorder %s971_s24, %s1249_s25 }
 0x24d   : > { %p973_p7 = pnand %p972_p4, %p1080_p5 }
 0x24e   : > { %p978_p11 = por %p977_p10, %p976_p9 }
 0x24f   : > { %p974_p8 = pneg %p973_p7 }
 0x250   : > { %p980_p13 = por %p979_p12, %p978_p11 }
 0x252   : > { %p981_p0 = pnand %p980_p13, %p974_p8 }
 0x254   : > { %984 = shalt.err (!%p981_p0)
}
 0x255   : > { %913 = dma.vmem_to_hbm [thread:$0]  (%p1080_p5), %s1251_s17, 32, %s1249_s25, %s678_s26  }
 0x256 PF: > { %p919_p1 = scmp.ge.s32.totalorder %s1019_s15, 2  ;;  %s704_s8 = sand.u32 1, %s1007_s12  }
 0x257   : > { %s705_s9 = scalar_lea.sflag [#allocation3], %s704_s8 }
 0x258   : > { %p916_p2 = pnand %p919_p1, %p1084_p6 }
 0x25a   : > { %1002 = dma.done.wait (!%p916_p2), %s705_s9, 32  }
 0x25b   : > { %1004 = vsyncadd (!%p916_p2), %s705_s9, 4294967264  ;;  %p13_p3 = scmp.ge.s32.totalorder %s1068_s18, 4   ;;  %s1299_s12 = smov %s1011_s13 }
 0x25c   : > { %s1300_s13 = smov %s1015_s14  ;;  %s1301_s14 = smov %s1078_s21 }
 0x25d   : > { %s1302_s15 = smov %s1068_s18  ;;  %15 = sbr.rel (!%p13_p3) target bundleno = 3 (0x3), region = 71 }
 0x264   :  { %710 = vsyncpa [#allocation3], 1 }
 0x265   :  { %712 = vsyncpa [#allocation3 + $0x1], 1 }

</bundles_post_ra>
